<compile_context>
chip_gen: v7x
topology: tpu7x:2x2x1
jax: 0.10.0
libtpu: 0.0.40
codegen_flags: <defaults>
</compile_context>

<pallas_src>
import jax
import jax.numpy as jnp
from jax.experimental import pallas as pl
from jax.experimental.pallas import tpu as pltpu

LANE = 128        # padded width for hidden feature dims (MXU/lane-native)
TILE_B_MAX = 2048 # default max batch-tile rows


def _round_up(x, m):
    return ((x + m - 1) // m) * m


def mlp_kernel(x_ref, w1_ref, b1_ref, w2_ref, b2_ref, w3_ref, b3_ref, o_ref):
    # fc1 + ReLU (dropout = identity in eval mode). Weights are lane-dense (padded to
    # 128); padded slots carry exact zeros so they contribute nothing downstream.
    h1 = jnp.dot(x_ref[...], w1_ref[...], preferred_element_type=jnp.float32)
    h1 = jnp.maximum(h1 + b1_ref[...], 0.0)
    # fc2 + ReLU (dropout = identity in eval mode)
    h2 = jnp.dot(h1, w2_ref[...], preferred_element_type=jnp.float32)
    h2 = jnp.maximum(h2 + b2_ref[...], 0.0)
    # fc3 on the MXU with lane-dense operands; only column 0 is meaningful, so store
    # just that column -> narrow (tile_b, 1) HBM writeback instead of a 128-wide slab.
    out = jnp.dot(h2, w3_ref[...], preferred_element_type=jnp.float32)
    o_ref[...] = (out[:, 0:1] + b3_ref[...]).astype(o_ref.dtype)


def _pad_linear(w, b, out_pad):
    """Zero-pad [in, out] weight / [1, out] bias to [in, out_pad] / [1, out_pad]."""
    fan_in, fan_out = w.shape
    wp = jnp.zeros((fan_in, out_pad), w.dtype).at[:, :fan_out].set(w)
    bp = jnp.zeros((1, out_pad), b.dtype).at[:, :fan_out].set(b.reshape(1, -1))
    return wp, bp


def pad_params(params):
    """One-time lane-dense zero-padding of the tiny inner dims (hoisted out of forward).

    fc1: [emb,32] -> [emb,128]; fc2: [32,4] -> [128,128]; fc3: [4,1] -> [128,128].
    Padded rows/cols are zero, so padded hidden units contribute exactly 0 through
    ReLU and the downstream zero-padded rows.
    """
    w1, b1, w2, b2, w3, b3 = (params["w1"], params["b1"], params["w2"],
                              params["b2"], params["w3"], params["b3"])
    w1p, b1p = _pad_linear(w1, b1, LANE)
    w2r = jnp.zeros((LANE, w2.shape[1]), w2.dtype).at[: w2.shape[0], :].set(w2)
    w2p, b2p = _pad_linear(w2r, b2, LANE)
    w3r = jnp.zeros((LANE, w3.shape[1]), w3.dtype).at[: w3.shape[0], :].set(w3)
    w3p, _ = _pad_linear(w3r, b3, LANE)
    b3p = b3.reshape(1, 1).astype(jnp.float32)
    return {"w1p": w1p, "b1p": b1p, "w2p": w2p, "b2p": b2p, "w3p": w3p, "b3p": b3p}


def neural_network_forward(x, padded_params, *, tile_b=None):
    """x: [B, emb] float32. padded_params: output of pad_params (lane-dense weights)."""
    p = padded_params
    B, emb = x.shape

    if tile_b is None:
        # Large tiles amortize the ~0.35us per-grid-step overhead; cap so the grid keeps
        # >=2 steps (v7x megacore sharding of the "parallel" batch axis).
        tile_b = min(TILE_B_MAX, _round_up(pl.cdiv(B, 2), 8))
    tile_b = _round_up(max(8, min(tile_b, _round_up(B, 8))), 8)
    grid = (pl.cdiv(B, tile_b),)  # partial tail block handled by Pallas read/write masking

    # Weights/biases: constant index_map -> DMA'd once, resident across grid steps.
    resident = lambda a: pl.BlockSpec(a.shape, lambda i: (0, 0))

    # VMEM budget: 2x (tile_b*emb*4) x-tile buffers + 2x (tile_b*128*4) output-tile
    # buffers + ~0.5 MiB resident weights + spilled intermediates — a few MiB at
    # tile_b=2048, emb<=O(100); 32 MiB limit is safe on v5e/v6e (128 MiB) and v7x (64 MiB).
    vmem_limit = 32 << 20

    flops = 2 * B * (emb * 32 + 32 * 4 + 4 * 1)
    bytes_accessed = 4 * (B * emb + B
                          + p["w1p"].size + p["w2p"].size + p["w3p"].size
                          + p["b1p"].size + p["b2p"].size + p["b3p"].size)
    cost = pl.CostEstimate(flops=flops, transcendentals=0,
                           bytes_accessed=bytes_accessed)

    out = pl.pallas_call(
        mlp_kernel,
        out_shape=jax.ShapeDtypeStruct((B, 1), jnp.float32),
        grid=grid,
        in_specs=[
            pl.BlockSpec((tile_b, emb), lambda i: (i, 0)),   # x: tiled over batch
            resident(p["w1p"]), resident(p["b1p"]),
            resident(p["w2p"]), resident(p["b2p"]),
            resident(p["w3p"]), resident(p["b3p"]),
        ],
        out_specs=pl.BlockSpec((tile_b, 1), lambda i: (i, 0)),  # narrow, no post-slice
        compiler_params=pltpu.CompilerParams(
            dimension_semantics=("parallel",),               # 2-TC sharding on v7x
            vmem_limit_bytes=vmem_limit,
        ),
        cost_estimate=cost,
    )(x, p["w1p"], p["b1p"], p["w2p"], p["b2p"], p["w3p"], p["b3p"])

    return out


def init_params(emb, key):
    """Deterministic init mirroring PyTorch Linear default (U(-1/sqrt(fan_in), +1/sqrt(fan_in)))."""
    keys = jax.random.split(key, 6)

    def lin(kw, kb, fan_in, fan_out):
        bound = 1.0 / jnp.sqrt(fan_in)
        w = jax.random.uniform(kw, (fan_in, fan_out), jnp.float32, -bound, bound)
        b = jax.random.uniform(kb, (1, fan_out), jnp.float32, -bound, bound)
        return w, b

    w1, b1 = lin(keys[0], keys[1], emb, 32)
    w2, b2 = lin(keys[2], keys[3], 32, 4)
    w3, b3 = lin(keys[4], keys[5], 4, 1)
    return {"w1": w1, "b1": b1, "w2": w2, "b2": b2, "w3": w3, "b3": b3}


def reference_forward(x, p):
    h1 = jnp.maximum(x @ p["w1"] + p["b1"], 0.0)
    h2 = jnp.maximum(h1 @ p["w2"] + p["b2"], 0.0)
    return h2 @ p["w3"] + p["b3"]


if __name__ == "__main__":
    key = jax.random.PRNGKey(0)
    k_x, k_x2, k_p = jax.random.split(key, 3)

    batch, emb = 16, 32
    x = jax.random.normal(k_x, (batch, emb), jnp.float32)
    params = init_params(emb, k_p)
    padded = pad_params(params)   # hoisted: padded once, reused across forwards

    # Auto tile -> tile_b=8, grid=(2,): exercises the tiled/pipelined, multi-step path.
    out = jax.block_until_ready(neural_network_forward(x, padded))
    ref = reference_forward(x, params)
    assert out.shape == (batch, 1)
    assert jnp.allclose(out, ref, atol=1e-5, rtol=1e-5)

    # Non-divisible batch (100 rows, tile_b=56, grid=(2,)) exercises the masked
    # partial tail block introduced by dropping the jnp.pad of x.
    x2 = jax.random.normal(k_x2, (100, emb), jnp.float32)
    out2 = jax.block_until_ready(neural_network_forward(x2, padded))
    ref2 = reference_forward(x2, params)
    assert out2.shape == (100, 1)
    assert jnp.allclose(out2, ref2, atol=1e-5, rtol=1e-5)

    print("KERNEL_OK")
</pallas_src>

<mosaic_0001>
module attributes {stable_mosaic.version = 11 : i64} {
  func.func @mlp_kernel(%arg0: i32, %arg1: memref<8x32xf32, #tpu.memory_space<vmem>>, %arg2: memref<32x128xf32, #tpu.memory_space<vmem>>, %arg3: memref<1x128xf32, #tpu.memory_space<vmem>>, %arg4: memref<128x128xf32, #tpu.memory_space<vmem>>, %arg5: memref<1x128xf32, #tpu.memory_space<vmem>>, %arg6: memref<128x128xf32, #tpu.memory_space<vmem>>, %arg7: memref<1x1xf32, #tpu.memory_space<vmem>>, %arg8: memref<8x1xf32, #tpu.memory_space<vmem>>) attributes {dimension_semantics = [#tpu.dimension_semantics<parallel>], iteration_bounds = array<i64: 2>, scalar_prefetch = 0 : i64, scratch_operands = 0 : i64, tpu.core_type = #tpu.core_type<tc>, window_params = [{transform_indices = @transform_0, window_bounds = array<i64: 8, 32>}, {pipeline_mode = #tpu.pipeline_mode<synchronous>, transform_indices = @transform_1, window_bounds = array<i64: 32, 128>}, {pipeline_mode = #tpu.pipeline_mode<synchronous>, transform_indices = @transform_2, window_bounds = array<i64: 1, 128>}, {pipeline_mode = #tpu.pipeline_mode<synchronous>, transform_indices = @transform_3, window_bounds = array<i64: 128, 128>}, {pipeline_mode = #tpu.pipeline_mode<synchronous>, transform_indices = @transform_4, window_bounds = array<i64: 1, 128>}, {pipeline_mode = #tpu.pipeline_mode<synchronous>, transform_indices = @transform_5, window_bounds = array<i64: 128, 128>}, {pipeline_mode = #tpu.pipeline_mode<synchronous>, transform_indices = @transform_6, window_bounds = array<i64: 1, 1>}, {transform_indices = @transform_7, window_bounds = array<i64: 8, 1>}]} {
    %c0 = arith.constant 0 : index
    %c0_0 = arith.constant 0 : index
    %0 = vector.load %arg1[%c0, %c0_0] : memref<8x32xf32, #tpu.memory_space<vmem>>, vector<8x32xf32>
    %c0_1 = arith.constant 0 : index
    %c0_2 = arith.constant 0 : index
    %1 = vector.load %arg2[%c0_1, %c0_2] : memref<32x128xf32, #tpu.memory_space<vmem>>, vector<32x128xf32>
    %cst = arith.constant dense<0.000000e+00> : vector<8x128xf32>
    %2 = tpu.matmul %0, %1, %cst {dimension_numbers = #tpu.dot_dimension_numbers<[1], [0], [0], [1], [0, 0, 1, 1], [], []>} : vector<8x32xf32>, vector<32x128xf32>, vector<8x128xf32> -> vector<8x128xf32>
    %c0_3 = arith.constant 0 : index
    %c0_4 = arith.constant 0 : index
    %3 = vector.load %arg3[%c0_3, %c0_4] : memref<1x128xf32, #tpu.memory_space<vmem>>, vector<1x128xf32>
    %4 = vector.broadcast %3 : vector<1x128xf32> to vector<8x128xf32>
    %5 = arith.addf %2, %4 : vector<8x128xf32>
    %cst_5 = arith.constant 0.000000e+00 : f32
    %6 = vector.broadcast %cst_5 : f32 to vector<8x128xf32>
    %7 = arith.maximumf %5, %6 : vector<8x128xf32>
    %c0_6 = arith.constant 0 : index
    %c0_7 = arith.constant 0 : index
    %8 = vector.load %arg4[%c0_6, %c0_7] : memref<128x128xf32, #tpu.memory_space<vmem>>, vector<128x128xf32>
    %cst_8 = arith.constant dense<0.000000e+00> : vector<8x128xf32>
    %9 = tpu.matmul %7, %8, %cst_8 {dimension_numbers = #tpu.dot_dimension_numbers<[1], [0], [0], [1], [0, 0, 1, 1], [], []>} : vector<8x128xf32>, vector<128x128xf32>, vector<8x128xf32> -> vector<8x128xf32>
    %c0_9 = arith.constant 0 : index
    %c0_10 = arith.constant 0 : index
    %10 = vector.load %arg5[%c0_9, %c0_10] : memref<1x128xf32, #tpu.memory_space<vmem>>, vector<1x128xf32>
    %11 = vector.broadcast %10 : vector<1x128xf32> to vector<8x128xf32>
    %12 = arith.addf %9, %11 : vector<8x128xf32>
    %cst_11 = arith.constant 0.000000e+00 : f32
    %13 = vector.broadcast %cst_11 : f32 to vector<8x128xf32>
    %14 = arith.maximumf %12, %13 : vector<8x128xf32>
    %c0_12 = arith.constant 0 : index
    %c0_13 = arith.constant 0 : index
    %15 = vector.load %arg6[%c0_12, %c0_13] : memref<128x128xf32, #tpu.memory_space<vmem>>, vector<128x128xf32>
    %cst_14 = arith.constant dense<0.000000e+00> : vector<8x128xf32>
    %16 = tpu.matmul %14, %15, %cst_14 {dimension_numbers = #tpu.dot_dimension_numbers<[1], [0], [0], [1], [0, 0, 1, 1], [], []>} : vector<8x128xf32>, vector<128x128xf32>, vector<8x128xf32> -> vector<8x128xf32>
    %17 = vector.extract_strided_slice %16 {offsets = [0, 0], sizes = [8, 1], strides = [1, 1]} : vector<8x128xf32> to vector<8x1xf32>
    %c0_15 = arith.constant 0 : index
    %c0_16 = arith.constant 0 : index
    %18 = vector.load %arg7[%c0_15, %c0_16] : memref<1x1xf32, #tpu.memory_space<vmem>>, vector<1x1xf32>
    %19 = vector.broadcast %18 : vector<1x1xf32> to vector<8x1xf32>
    %20 = arith.addf %17, %19 : vector<8x1xf32>
    %c0_17 = arith.constant 0 : index
    %c0_18 = arith.constant 0 : index
    %21 = vector.load %arg8[%c0_17, %c0_18] : memref<8x1xf32, #tpu.memory_space<vmem>>, vector<8x1xf32>
    tpu.vector_store %arg8[%c0_17, %c0_18], %20 {strides = array<i32>} : memref<8x1xf32, #tpu.memory_space<vmem>>, vector<8x1xf32>,
    return
  }
  func.func @transform_0(%arg0: i32) -> (i32, i32) {
    %c0_i32 = arith.constant 0 : i32
    %c0_i32_0 = arith.constant 0 : i32
    return %arg0, %c0_i32 : i32, i32
  }
  func.func @transform_1(%arg0: i32) -> (i32, i32) {
    %c0_i32 = arith.constant 0 : i32
    %c0_i32_0 = arith.constant 0 : i32
    %c0_i32_1 = arith.constant 0 : i32
    return %c0_i32, %c0_i32_0 : i32, i32
  }
  func.func @transform_2(%arg0: i32) -> (i32, i32) {
    %c0_i32 = arith.constant 0 : i32
    %c0_i32_0 = arith.constant 0 : i32
    %c0_i32_1 = arith.constant 0 : i32
    return %c0_i32, %c0_i32_0 : i32, i32
  }
  func.func @transform_3(%arg0: i32) -> (i32, i32) {
    %c0_i32 = arith.constant 0 : i32
    %c0_i32_0 = arith.constant 0 : i32
    %c0_i32_1 = arith.constant 0 : i32
    return %c0_i32, %c0_i32_0 : i32, i32
  }
  func.func @transform_4(%arg0: i32) -> (i32, i32) {
    %c0_i32 = arith.constant 0 : i32
    %c0_i32_0 = arith.constant 0 : i32
    %c0_i32_1 = arith.constant 0 : i32
    return %c0_i32, %c0_i32_0 : i32, i32
  }
  func.func @transform_5(%arg0: i32) -> (i32, i32) {
    %c0_i32 = arith.constant 0 : i32
    %c0_i32_0 = arith.constant 0 : i32
    %c0_i32_1 = arith.constant 0 : i32
    return %c0_i32, %c0_i32_0 : i32, i32
  }
  func.func @transform_6(%arg0: i32) -> (i32, i32) {
    %c0_i32 = arith.constant 0 : i32
    %c0_i32_0 = arith.constant 0 : i32
    %c0_i32_1 = arith.constant 0 : i32
    return %c0_i32, %c0_i32_0 : i32, i32
  }
  func.func @transform_7(%arg0: i32) -> (i32, i32) {
    %c0_i32 = arith.constant 0 : i32
    %c0_i32_0 = arith.constant 0 : i32
    return %arg0, %c0_i32 : i32, i32
  }
}

</mosaic_0001>

<bundles_post_ra>
// kernel: tpu_custom_call.1
= control target key start
LH: loop header
LB: loop body
LE: loop exit
PB: predicated region body
PF: predicated region fallthrough
CT: control target
= control target key end

     0   :  { %s1435_s0 = inlined_call_operand.hbm [shape: f32[16,32], index: 0, kind: input, shape index: {}]   ;;  %s1436_s1 = inlined_call_operand.hbm [shape: f32[32,128], index: 1, kind: input, shape index: {}]   ;;  %s1437_s2 = inlined_call_operand.vmem [shape: f32[1,128], index: 2, kind: input, shape index: {}]   ;;  %s1438_s3 = inlined_call_operand.hbm [shape: f32[128,128], index: 3, kind: input, shape index: {}]   ;;  %s1439_s4 = inlined_call_operand.vmem [shape: f32[1,128], index: 4, kind: input, shape index: {}]   ;;  %s1440_s5 = inlined_call_operand.hbm [shape: f32[128,128], index: 5, kind: input, shape index: {}]   ;;  %s1441_s6 = inlined_call_operand.<no memory space> [shape: f32[1,1], index: 6, kind: input, shape index: {}]   ;;  %s1442_s7 = inlined_call_operand.vmem [shape: f32[16,1], index: 7, kind: output, shape index: {}]  }
   0x1   :  { %v12_v0 = vstv %s1441_s6 }
   0x2   :  { %13 = vst [vmem:[#allocation2] sm:$0x1] %v12_v0 }
   0x3   :  { %14 = vsyncpa [#allocation4], 0 }
   0x4   :  { %16 = vsyncpa [#allocation4 + $0x1], 0 }
   0x5   :  { %17 = vsyncpa [#allocation6], 0 }
   0x6   :  { %18 = vsyncpa [#allocation9], 0  ;;  %s1190_s26 = smov 0   ;;  %s1192_s27 = smov 0  }
   0x7   :  { %s1194_s28 = smov 0   ;;  %s1196_s29 = smov 0  }
   0x8 LB: > { %s1209_s6 = sadd.s32 4294967295, %s1136_s29   ;;  %p44_p0 = scmp.ne.s32.totalorder %s1128_s27, %s1124_s26  ;;  %s1136_s29 = sphi %s1196_s29, %s1460_s29   ;;  %s1132_s28 = sphi %s1194_s28, %s1459_s28   ;;  %s1128_s27 = sphi %s1192_s27, %s1458_s27   ;;  %s1124_s26 = sphi %s1190_s26, %s1457_s26  }
   0x9   : > { %p1443_p1 = scmp.eq.s32.totalorder %s1209_s6, 0  ;;  %p712_p2 = scmp.ge.s32.totalorder %s1136_s29, 1 }
   0xa   : > { %p207_p3 = scmp.lt.s32.totalorder %s1136_s29, 3  ;;  %s1138_s9 = smov [#allocation5]  }
   0xb   : > { %p1217_p4 = por %p1443_p1, %p44_p0  ;;  %s219_s10 = sshll.u32 %s1138_s9, 4  ;;  %s1225_s10 = int_to_ptr.vmem [resolvable:$true] %s219_s10 }
   0xc   : > { %p1221_p5 = pnand %p712_p2, %p207_p3  ;;  %s1139_s12 = smov [#allocation7]  }
   0xd   : > { %s1446_s30 = scalar_select %p1217_p4, 1, 0 }
   0xe   : > { %s1447_s8 = scalar_select %p1221_p5, 1, 0 }
   0xf   : > { %p919_p6 = pneg %p1221_p5  ;;  %s235_s13 = sshll.u32 %s1139_s12, 4  ;;  %s1235_s13 = int_to_ptr.vmem [resolvable:$true] %s235_s13 }
  0x10   : > { %s1140_s14 = smov [#allocation8]   ;;  %s980_s18 = scalar_lea.hbm %s1436_s1, 512 }
  0x11   : > { %p1231_p7 = pnand %p919_p6, %p1443_p1  ;;  %s1237_s15 = sshll.u32 %s1140_s14, 4  ;;  %s252_s15 = int_to_ptr.vmem [resolvable:$true] %s1237_s15 }
  0x12   : > { %p981_p8 = scmp.ne.s32.totalorder %s1436_s1, %s980_s18  ;;  %p987_p12 = scmp.lt.u32.totalorder %s980_s18, %s1436_s1 }
  0x13   : > { %p1247_p9 = pneg %p1231_p7 }
  0x15   : > { %p983_p10 = pnand %p1247_p9, %p981_p8 }
  0x17   : > { %p984_p11 = pneg %p983_p10 }
  0x19   : > { %p989_p13 = pnand %p987_p12, %p984_p11 }
  0x1b   : > { %992 = shalt.err (!%p989_p13)
}
  0x1c   : > { %s993_s24 = scalar_lea.vmem %s1225_s10, 512  ;;  %p1001_p6 = scmp.lt.s32.totalorder %s1225_s10, %s1225_s10 }
  0x1d   : > { %p994_p0 = scmp.ne.s32.totalorder %s1225_s10, %s993_s24  ;;  %p1002_p1 = scmp.lt.s32.totalorder %s993_s24, %s993_s24 }
  0x1f   : > { %p996_p2 = pnand %p994_p0, %p1247_p9  ;;  %p1003_p8 = por %p1002_p1, %p1001_p6 }
  0x21   : > { %p997_p3 = pneg %p996_p2 }
  0x23   : > { %p1004_p10 = pnand %p1003_p8, %p997_p3 }
  0x25   : > { %1007 = shalt.err (!%p1004_p10)
}
  0x26   : > { %s1141_s25 = smov 128   ;;  %s1142_s26 = smov 8  }
  0x27   : > { %922 = dma.hbm_to_vmem [thread:$0]  (!%p1231_p7), %s1436_s1, 512, %s1225_s10, [#allocation6], %s1141_s25, %s1141_s25, %s1142_s26  }
  0x28   : > { %s1008_s17 = scalar_lea.hbm %s1438_s3, 2048 }
  0x29   : > { %p1009_p1 = scmp.ne.s32.totalorder %s1438_s3, %s1008_s17  ;;  %p1015_p13 = scmp.lt.u32.totalorder %s1008_s17, %s1438_s3 }
  0x2b   : > { %p1011_p11 = pnand %p1009_p1, %p1247_p9 }
  0x2d   : > { %p1012_p12 = pneg %p1011_p11 }
  0x2f   : > { %p1017_p0 = pnand %p1015_p13, %p1012_p12 }
  0x31   : > { %1020 = shalt.err (!%p1017_p0)
}
  0x32   : > { %s1021_s10 = scalar_lea.vmem %s1235_s13, 2048  ;;  %p1029_p8 = scmp.lt.s32.totalorder %s1235_s13, %s1235_s13 }
  0x33   : > { %p1022_p2 = scmp.ne.s32.totalorder %s1235_s13, %s1021_s10  ;;  %p1030_p10 = scmp.lt.s32.totalorder %s1021_s10, %s1021_s10 }
  0x35   : > { %p1024_p3 = pnand %p1022_p2, %p1247_p9  ;;  %p1031_p1 = por %p1030_p10, %p1029_p8 }
  0x37   : > { %p1025_p6 = pneg %p1024_p3 }
  0x39   : > { %p1032_p11 = pnand %p1031_p1, %p1025_p6 }
  0x3b   : > { %1035 = shalt.err (!%p1032_p11)
}
  0x3c   : > { %925 = dma.hbm_to_vmem [thread:$0]  (!%p1231_p7), %s1438_s3, 2048, %s1235_s13, [#allocation6], %s1141_s25, %s1141_s25, %s1142_s26  }
  0x3d   : > { %s1036_s14 = scalar_lea.hbm %s1440_s5, 2048 }
  0x3e   : > { %p1037_p12 = scmp.ne.s32.totalorder %s1440_s5, %s1036_s14  ;;  %p1043_p2 = scmp.lt.u32.totalorder %s1036_s14, %s1440_s5 }
  0x40   : > { %p1039_p13 = pnand %p1037_p12, %p1247_p9 }
  0x42   : > { %p1040_p0 = pneg %p1039_p13 }
  0x44   : > { %p1045_p3 = pnand %p1043_p2, %p1040_p0 }
  0x46   : > { %1048 = shalt.err (!%p1045_p3)
}
  0x47   : > { %s1049_s20 = scalar_lea.vmem %s252_s15, 2048  ;;  %p1057_p1 = scmp.lt.s32.totalorder %s252_s15, %s252_s15 }
  0x48   : > { %p1050_p6 = scmp.ne.s32.totalorder %s252_s15, %s1049_s20  ;;  %p1058_p11 = scmp.lt.s32.totalorder %s1049_s20, %s1049_s20 }
  0x4a   : > { %p1052_p8 = pnand %p1050_p6, %p1247_p9  ;;  %p1059_p4 = por %p1058_p11, %p1057_p1 }
  0x4c   : > { %p1053_p10 = pneg %p1052_p8 }
  0x4e   : > { %p1060_p5 = pnand %p1059_p4, %p1053_p10 }
  0x50   : > { %1063 = shalt.err (!%p1060_p5)
}
  0x51   : > { %928 = dma.hbm_to_vmem [thread:$0]  (!%p1231_p7), %s1440_s5, 2048, %s252_s15, [#allocation9], %s1141_s25, %s1141_s25, %s1142_s26  }
  0x52   : > { %s1320_s21 = sadd.s32 1, %s1136_s29   ;;  %s31_s10 = sadd.s32 1, %s1132_s28 }
  0x53   : > { %s28_s11 = ssub.s32 %s1136_s29, %s1320_s21  ;;  %p38_p5 = scmp.ne.s32.totalorder %s1132_s28, %s1128_s27 }
  0x54   : > { %p29_p4 = scmp.eq.s32.totalorder %s28_s11, 0  ;;  %p39_p9 = scmp.eq.s32.totalorder %s1136_s29, 0 }
  0x55   : > { %p936_p12 = scmp.lt.s32.totalorder %s1136_s29, 2  ;;  %s268_s24 = sand.u32 1, %s1132_s28  }
  0x56   : > { %s1330_s23 = scalar_select %p29_p4, %s1132_s28, %s31_s10  }
  0x57   : > { %p40_p13 = por %p39_p9, %p38_p5  ;;  %s717_s9 = sshll.u32 %s268_s24, 3 }
  0x58   : > { %s718_s12 = sshll.u32 %s1136_s29, 7  ;;  %s272_s15 = scalar_lea.vmem [#allocation3], %s717_s9 }
  0x59   : > { %s1337_s17 = scalar_lea.hbm %s1435_s0, %s718_s12  ;;  %s279_s25 = sshll.u32 %s272_s15, 4  ;;  %s1339_s25 = int_to_ptr.vmem [resolvable:$true] %s279_s25 }
  0x5a   : > { %p1341_p7 = pnand %p936_p12, %p40_p13  ;;  %s269_s29 = scalar_lea.sflag [#allocation4], %s268_s24 }
  0x5b   : > { %s1064_s18 = scalar_lea.hbm %s1337_s17, 128  ;;  %s1069_s13 = scalar_lea.hbm %s1435_s0, 256 }
  0x5c   : > { %p1065_p0 = scmp.ne.s32.totalorder %s1337_s17, %s1064_s18  ;;  %p1066_p2 = pneg %p1341_p7 }
  0x5d   : > { %p1070_p8 = scmp.lt.u32.totalorder %s1337_s17, %s1435_s0  ;;  %p1071_p10 = scmp.lt.u32.totalorder %s1069_s13, %s1064_s18 }
  0x5e   : > { %p1067_p3 = pnand %p1066_p2, %p1065_p0  ;;  %p1073_p11 = scmp.lt.u32.totalorder %s1064_s18, %s1337_s17 }
  0x5f   : > { %p1072_p1 = por %p1071_p10, %p1070_p8 }
  0x60   : > { %p1068_p6 = pneg %p1067_p3 }
  0x61   : > { %p1074_p4 = por %p1073_p11, %p1072_p1 }
  0x63   : > { %p1075_p5 = pnand %p1074_p4, %p1068_p6 }
  0x65   : > { %1078 = shalt.err (!%p1075_p5)
}
  0x66   : > { %s1079_s10 = scalar_lea.vmem %s1339_s25, 128  ;;  %s1143_s24 = smov [#allocation3]  }
  0x67   : > { %p1080_p9 = scmp.ne.s32.totalorder %s1339_s25, %s1079_s10  ;;  %s1084_s9 = sshll.u32 %s1143_s24, 4  ;;  %s1085_s9 = int_to_ptr.vmem [resolvable:$false] %s1084_s9 }
  0x68   : > { %s1086_s12 = scalar_lea.vmem %s1085_s9, 256  ;;  %p1087_p0 = scmp.lt.s32.totalorder %s1339_s25, %s1085_s9 }
  0x69   : > { %p1082_p12 = pnand %p1080_p9, %p1066_p2  ;;  %p1088_p3 = scmp.lt.s32.totalorder %s1086_s12, %s1079_s10 }
  0x6b   : > { %p1083_p13 = pneg %p1082_p12  ;;  %p1089_p8 = por %p1088_p3, %p1087_p0 }
  0x6d   : > { %p1090_p10 = pnand %p1089_p8, %p1083_p13 }
  0x6f   : > { %1093 = shalt.err (!%p1090_p10)
}
  0x70   : > { %932 = dma.hbm_to_vmem [thread:$0]  (!%p1341_p7), %s1337_s17, 128, %s1339_s25, %s269_s29  }
  0x71   : > { %p1451_p6 = scmp.ne.s32.totalorder %s1447_s8, 0 }
  0x72   : > { %s290_s14 = sand.u32 (!%p1451_p6), 1, %s1128_s27   ;;  %p1452_p2 = scmp.ne.s32.totalorder (!%p1451_p6), %s1446_s30, 0 }
  0x73   : > { %288 = sbr.rel (%p1451_p6) target bundleno = 786 (0x312), region = 48  ;;  %s1373_s16 = sshll.u32 (!%p1451_p6), %s290_s14, 3 }
  0x74   : > { %s291_s15 = scalar_lea.sflag (!%p1451_p6), [#allocation4], %s290_s14  ;;  %s294_s18 = scalar_lea.vmem (!%p1451_p6), [#allocation3], %s1373_s16 }
  0x7a   : > { %1111 = dma.done.wait (%p1452_p2), %s291_s15, 128  }
  0x7b   : > { %1113 = vsyncadd (%p1452_p2), %s291_s15, 4294967168  ;;  %p1453_p1 = scmp.eq.s32.totalorder %s1209_s6, 0 }
  0x7d   : > { %1115 = dma.done.wait (%p1453_p1), [#allocation6], 2560   ;;  %p1454_p7 = pmov %p1453_p1 }
  0x7e   : > { %p1455_p11 = pmov %p1453_p1 }
  0x7f   : > { %1117 = vsyncadd (%p1454_p7), [#allocation6], 4294964736 }
  0x80   : > { %1119 = dma.done.wait (%p1455_p11), [#allocation9], 2048   ;;  %p1456_p4 = pmov %p1453_p1 }
  0x81   : > { %v1144_v1 = vmov 0.0|0.0   ;;  %vm1145_vm0 = vmmov 0   ;;  %v1146_v2 = vmov 0.0   ;;  %v341_v3 = vld [vmem:[#allocation5] sm:$0xff]  ;;  %v342_v4 = vld [vmem:[#allocation5 + $0x8] sm:$0xff]  ;;  %v343_v5 = vld [vmem:[#allocation5 + $0x10] sm:$0xff] }
  0x82   : > { %1121 = vsyncadd (%p1456_p4), [#allocation9], 4294965248  ;;  %851 = vmatprep.subr.bf16.mxu0 %v1144_v1  ;;  %778 = vmatprep.mubr.msk.f32.mxu0 %vm1145_vm0, %v1146_v2  ;;  %v852_v6 = vpack.c.bf16 %v342_v4, %v341_v3  ;;  %v344_v7 = vld [vmem:[#allocation5 + $0x18] sm:$0xff]  ;;  %v427_v8 = vld [vmem:[#allocation7] sm:$0xff]  ;;  %vm352_vm1 = vcmask 261120   ;;  %p336_p5 = scmp.lt.s32.totalorder %s1209_s6, 1 }
  0x83   : > { %857 = vmatprep.subr.bf16.mxu1 %v1144_v1  ;;  %813 = vmatprep.mubr.msk.f32.mxu1 %vm1145_vm0, %v1146_v2  ;;  %v428_v9 = vld [vmem:[#allocation7 + $0x8] sm:$0xff]  ;;  %v429_v10 = vld [vmem:[#allocation7 + $0x10] sm:$0xff]  ;;  %v430_v11 = vld [vmem:[#allocation7 + $0x18] sm:$0xff]  ;;  %v855_v12 = vpack.c.bf16 %v344_v7, %v343_v5  ;;  %vm615_vm2 = vcmask 7168  }
  0x84   : > { %853 = vmatpush3.bf16.msra.mxu0 %v852_v6  ;;  %v858_v13 = vpack.c.bf16 %v428_v9, %v427_v8  ;;  %v861_v14 = vpack.c.bf16 %v430_v11, %v429_v10  ;;  %v431_v15 = vld [vmem:[#allocation7 + $0x20] sm:$0xff]  ;;  %v432_v16 = vld [vmem:[#allocation7 + $0x28] sm:$0xff]  ;;  %v340_v17 = vld [vmem:[%s294_s18] sm:$0xff]  ;;  %s1462_s6 = smov (!%p336_p5, %s1209_s6), 1 }
  0x85   : > { %854 = vmatprep.subr.bf16.mxu0 %v1144_v1  ;;  %v864_v18 = vpack.c.bf16 %v432_v16, %v431_v15  ;;  %v433_v19 = vld [vmem:[#allocation7 + $0x30] sm:$0xff]  ;;  %v434_v20 = vld [vmem:[#allocation7 + $0x38] sm:$0xff]  ;;  %v435_v22 = vld [vmem:[#allocation7 + $0x40] sm:$0xff]  ;;  %s724_s26 = sshll.u32 %s1462_s6, 3 }
  0x86   : > { %859 = vmatpush3.bf16.msra.mxu1 %v858_v13  ;;  %v867_v21 = vpack.c.bf16 %v434_v20, %v433_v19  ;;  %v436_v23 = vld [vmem:[#allocation7 + $0x48] sm:$0xff]  ;;  %v437_v25 = vld [vmem:[#allocation7 + $0x50] sm:$0xff]  ;;  %v438_v26 = vld [vmem:[#allocation7 + $0x58] sm:$0xff]  ;;  %s339_s20 = scalar_lea.vmem %s1442_s7, %s724_s26 }
  0x87   : > { %860 = vmatprep.subr.bf16.mxu1 %v1144_v1  ;;  %v870_v24 = vpack.c.bf16 %v436_v23, %v435_v22  ;;  %v873_v27 = vpack.c.bf16 %v438_v26, %v437_v25  ;;  %v439_v28 = vld [vmem:[#allocation7 + $0x60] sm:$0xff]  ;;  %v440_v29 = vld [vmem:[#allocation7 + $0x68] sm:$0xff]  ;;  %v441_v31 = vld [vmem:[#allocation7 + $0x70] sm:$0xff] }
  0x88   : > { %856 = vmatpush3.bf16.msra.mxu0 %v855_v12  ;;  %v876_v30 = vpack.c.bf16 %v440_v29, %v439_v28  ;;  %v442_v32 = vld [vmem:[#allocation7 + $0x78] sm:$0xff]  ;;  %v521_v34 = vld [vmem:[#allocation8] sm:$0xff]  ;;  %v522_v35 = vld [vmem:[#allocation8 + $0x8] sm:$0xff] }
  0x89   : > { %881 = vmatprep.subr.bf16.mxu0 %v1144_v1  ;;  %v879_v33 = vpack.c.bf16 %v442_v32, %v441_v31  ;;  %v523_v36 = vld [vmem:[#allocation8 + $0x10] sm:$0xff]  ;;  %v882_v37 = vpack.c.bf16 %v522_v35, %v521_v34  ;;  %v524_v38 = vld [vmem:[#allocation8 + $0x18] sm:$0xff]  ;;  %v525_v40 = vld [vmem:[#allocation8 + $0x20] sm:$0xff] }
  0x8a   : > { %862 = vmatpush3.bf16.msra.mxu1 %v861_v14  ;;  %v885_v39 = vpack.c.bf16 %v524_v38, %v523_v36  ;;  %v526_v41 = vld [vmem:[#allocation8 + $0x28] sm:$0xff]  ;;  %v527_v43 = vld [vmem:[#allocation8 + $0x30] sm:$0xff]  ;;  %v528_v44 = vld [vmem:[#allocation8 + $0x38] sm:$0xff] }
  0x8b   : > { %779 = vmatmul.mubr.msk.f32.vlgmr.msra.gmra.mrb[0].mxu0 %vm352_vm1, %v340_v17  ;;  %863 = vmatprep.subr.bf16.mxu1 %v1144_v1  ;;  %v888_v42 = vpack.c.bf16 %v526_v41, %v525_v40  ;;  %v891_v45 = vpack.c.bf16 %v528_v44, %v527_v43  ;;  %v529_v46 = vld [vmem:[#allocation8 + $0x40] sm:$0xff]  ;;  %v530_v47 = vld [vmem:[#allocation8 + $0x48] sm:$0xff]  ;;  %v531_v49 = vld [vmem:[#allocation8 + $0x50] sm:$0xff] }
  0x8c   : > { %848 = vmatprep.mubr.msk.f32.mxu0 %vm1145_vm0, %v1146_v2  ;;  %883 = vmatpush3.bf16.msra.mxu0 %v882_v37  ;;  %v894_v48 = vpack.c.bf16 %v530_v47, %v529_v46  ;;  %v532_v50 = vld [vmem:[#allocation8 + $0x58] sm:$0xff]  ;;  %v533_v52 = vld [vmem:[#allocation8 + $0x60] sm:$0xff]  ;;  %v534_v53 = vld [vmem:[#allocation8 + $0x68] sm:$0xff] }
  0x8d   : > { %884 = vmatprep.subr.bf16.mxu0 %v1144_v1  ;;  %v897_v51 = vpack.c.bf16 %v532_v50, %v531_v49  ;;  %v900_v54 = vpack.c.bf16 %v534_v53, %v533_v52  ;;  %v725_v55 = vld [vmem:[%s1437_s2] ss:$0 sm:$0xff]  ;;  %v535_v60 = vld [vmem:[#allocation8 + $0x70] sm:$0xff]  ;;  %v536_v61 = vld [vmem:[#allocation8 + $0x78] sm:$0xff] }
  0x8e   : > { %865 = vmatpush3.bf16.msra.mxu1 %v864_v18  ;;  %v903_v62 = vpack.c.bf16 %v536_v61, %v535_v60  ;;  %v727_v63 = vld [vmem:[%s1439_s4] ss:$0 sm:$0xff] }
  0x8f   : > { %866 = vmatprep.subr.bf16.mxu1 %v1144_v1  ;;  %v728_v4 = vld [vmem:[#allocation2] ss:$0 sm:$0xff] }
  0x90   : > { %886 = vmatpush3.bf16.msra.mxu0 %v885_v39 }
  0x91   : > { %887 = vmatprep.subr.bf16.mxu0 %v1144_v1 }
  0x92   : > { %868 = vmatpush3.bf16.msra.mxu1 %v867_v21 }
  0x93   : > { %869 = vmatprep.subr.bf16.mxu1 %v1144_v1 }
  0x94   : > { %889 = vmatpush3.bf16.msra.mxu0 %v888_v42 }
  0x95   : > { %890 = vmatprep.subr.bf16.mxu0 %v1144_v1 }
  0x96   : > { %871 = vmatpush3.bf16.msra.mxu1 %v870_v24 }
  0x97   : > { %872 = vmatprep.subr.bf16.mxu1 %v1144_v1 }
  0x98   : > { %892 = vmatpush3.bf16.msra.mxu0 %v891_v45 }
  0x99   : > { %893 = vmatprep.subr.bf16.mxu0 %v1144_v1 }
  0x9a   : > { %874 = vmatpush3.bf16.msra.mxu1 %v873_v27 }
  0x9b   : > { %875 = vmatprep.subr.bf16.mxu1 %v1144_v1 }
  0x9c   : > { %895 = vmatpush3.bf16.msra.mxu0 %v894_v48 }
  0x9d   : > { %896 = vmatprep.subr.bf16.mxu0 %v1144_v1 }
  0x9e   : > { %877 = vmatpush3.bf16.msra.mxu1 %v876_v30 }
  0x9f   : > { %878 = vmatprep.subr.bf16.mxu1 %v1144_v1 }
  0xa0   : > { %898 = vmatpush3.bf16.msra.mxu0 %v897_v51 }
  0xa1   : > { %899 = vmatprep.subr.bf16.mxu0 %v1144_v1 }
  0xa2   : > { %880 = vmatpush3.bf16.msra.mxu1 %v879_v33 }
  0xa4   : > { %901 = vmatpush3.bf16.msra.mxu0 %v900_v54 }
  0xa5   : > { %902 = vmatprep.subr.bf16.mxu0 %v1144_v1 }
  0xa8   : > { %904 = vmatpush3.bf16.msra.mxu0 %v903_v62 }
 0x15e   : > { %v422_v56 = vpop.f32.mrb[0].mxu0 }
 0x15f   : > { %v423_v57 = vadd.f32 %v725_v55, %v422_v56  ;;  %v780_v58 = vpop.f32.mrb[1].mxu0 }
 0x161   : > { %v426_v59 = vmax.f32 %v423_v57, 0.0 }
 0x163   : > { %814 = vmatmul.mubr.f32.vlgmr.msra.gmra.mrb[0].mxu1 %v426_v59 }
 0x236   : > { %v516_v0 = vpop.f32.mrb[0].mxu1 }
 0x237   : > { %v517_v1 = vadd.f32 %v727_v63, %v516_v0  ;;  %v815_v2 = vpop.f32.mrb[1].mxu1 }
 0x239   : > { %v520_v3 = vmax.f32 %v517_v1, 0.0 }
 0x23b   : > { %849 = vmatmul.mubr.f32.vlgmr.msra.gmra.mrb[2].mxu0 %v520_v3 }
 0x30e   : > { %v603_v5 = vpop.f32.mrb[2].mxu0 }
 0x30f   : > { %v614_v6 = vadd.f32 %v728_v4, %v603_v5  ;;  %v850_v7 = vpop.f32.mrb[3].mxu0 }
 0x311   : > { %616 = vst.msk [vmem:[%s339_s20] sm:$0xff] %vm615_vm2, %v614_v6 }
 0x312 PF: > { %p21_p9 = scmp.ge.s32.totalorder %s1320_s21, 4   ;;  %s1457_s26 = smov %s1128_s27 }
 0x313   : > { %s1458_s27 = smov %s1132_s28  ;;  %s1459_s28 = smov %s1330_s23 }
 0x314   : > { %s1460_s29 = smov %s1320_s21  ;;  %23 = sbr.rel (!%p21_p9) target bundleno = 8 (0x8), region = 100 }
 0x31b   :  { %636 = vsyncpa [#allocation4], 1 }
 0x31c   :  { %638 = vsyncpa [#allocation4 + $0x1], 1 }
 0x31d   :  { %639 = vsyncpa [#allocation6], 1 }
 0x31e   :  { %640 = vsyncpa [#allocation9], 1 }

</bundles_post_ra>
